<compile_context>
chip_gen: v7x
topology: tpu7x:2x2x1
jax: 0.10.0
libtpu: 0.0.40
codegen_flags: <defaults>
</compile_context>

<pallas_src>
import functools

import jax
import jax.numpy as jnp
from jax.experimental import pallas as pl
from jax.experimental.pallas import tpu as pltpu


def _round_up(x, m):
    return (x + m - 1) // m * m


# --------------------------------------------------------------------------- #
# Kernel
# --------------------------------------------------------------------------- #
def leaf_fused_kernel(x_ref, w12_ref, b12_ref, o_ref, *, compute_dtype):
    # Cast the streamed f32 feature tile on the VPU (free under the DMA; avoids
    # a standalone wrapper-side cast pass over HBM), run one MXU matmul with
    # f32 accumulation, add the f32 fused bias, cast to the output dtype.
    x = x_ref[...].astype(compute_dtype)
    y = jnp.dot(x, w12_ref[...], preferred_element_type=jnp.float32)
    o_ref[...] = (y + b12_ref[...]).astype(o_ref.dtype)


# --------------------------------------------------------------------------- #
# Parameter fusion (do once at init; cache the result)
# --------------------------------------------------------------------------- #
def fuse_leaf_params(w1, b1, w2, b2, *, weight_dtype=jnp.bfloat16):
    """Collapse the two affine layers:  (x @ W1 + b1) @ W2 + b2 == x @ W12 + b12.

    w1: [F, H], b1: [1, H], w2: [H, C], b2: [1, C]  ->  (W12: [F, C], b12: [1, C]).
    Done in f32 at HIGHEST precision so the only low-precision rounding is the
    final cast of W12 to the kernel compute dtype.
    """
    f32 = jnp.float32
    hi = jax.lax.Precision.HIGHEST
    w12 = jnp.dot(w1.astype(f32), w2.astype(f32), precision=hi)                 # [F, C]
    b12 = jnp.dot(b1.astype(f32).reshape(1, -1), w2.astype(f32), precision=hi)  # [1, C]
    b12 = b12 + b2.astype(f32).reshape(1, -1)
    return w12.astype(weight_dtype), b12.astype(f32)


# --------------------------------------------------------------------------- #
# Tile selection
# --------------------------------------------------------------------------- #
def _choose_batch_tile(B, requested=None):
    """Biggest sensible batch tile: default cap 8192 rows, multiple of 16
    (bf16 packs 16 sublanes/vreg); for large batches keep >= 2 grid steps so
    the parallel axis can shard across v7x's two TensorCores."""
    if B <= 16:
        return _round_up(B, 8)           # single tiny block covering the batch
    tb = min(requested if requested is not None else 8192, B)
    if B >= 2048:
        # Ensure at least 2 grid steps (dual-TC) without making tiles tiny.
        tb = min(tb, max(1024, _round_up(pl.cdiv(B, 2), 16)))
    return _round_up(tb, 16)


# --------------------------------------------------------------------------- #
# Forward wrappers
# --------------------------------------------------------------------------- #
_PALLAS_MIN_BATCH = 512  # below this a plain fused XLA dot beats launch overhead


def leaf_forward_fused(features, w12, b12, *, batch_tile=None, out_dtype=None,
                       use_pallas=None):
    """features: [B, F] (f32/bf16), w12: [F, C], b12: [1, C]  ->  [B, C]."""
    B, F = features.shape
    Fw, C = w12.shape
    assert Fw == F and b12.shape == (1, C)
    out_dtype = out_dtype or features.dtype
    # Note: on v5e, passing out_dtype=jnp.bfloat16 halves output store traffic
    # (single vst slot there) if the consumer tolerates it.

    if use_pallas is None:
        use_pallas = B >= _PALLAS_MIN_BATCH
    if not use_pallas:
        # Tiny batch: the fused XLA dot is sub-microsecond and fuses bias+cast.
        y = jnp.dot(features.astype(w12.dtype), w12,
                    preferred_element_type=jnp.float32) + b12
        return y.astype(out_dtype)

    compute_dtype = w12.dtype
    tb = _choose_batch_tile(B, batch_tile)
    grid = (pl.cdiv(B, tb),)             # ragged last block handled by masking

    # 3-deep buffering on the only streamed operand once the grid is long
    # enough to benefit (extra buffer is only tb*F*4 bytes of VMEM).
    x_spec_kwargs = {}
    if grid[0] >= 3:
        x_spec_kwargs = dict(pipeline_mode=pl.Buffered(3))

    cost = pl.CostEstimate(
        flops=2 * B * F * C,
        transcendentals=0,
        bytes_accessed=(features.size * features.dtype.itemsize
                        + w12.size * w12.dtype.itemsize
                        + b12.size * b12.dtype.itemsize
                        + B * C * jnp.dtype(out_dtype).itemsize),
    )

    kernel = functools.partial(leaf_fused_kernel, compute_dtype=compute_dtype)

    return pl.pallas_call(
        kernel,
        out_shape=jax.ShapeDtypeStruct((B, C), out_dtype),
        grid_spec=pltpu.PrefetchScalarGridSpec(
            num_scalar_prefetch=0,
            grid=grid,
            in_specs=[
                pl.BlockSpec((tb, F), lambda i: (i, 0), **x_spec_kwargs),  # streamed
                pl.BlockSpec((F, C), lambda i: (0, 0)),                    # resident
                pl.BlockSpec((1, C), lambda i: (0, 0)),                    # resident
            ],
            out_specs=pl.BlockSpec((tb, C), lambda i: (i, 0)),
        ),
        compiler_params=pltpu.CompilerParams(
            # Independent batch axis: shards across v7x's two TensorCores when
            # the grid has >= 2 steps; harmless on v5e/v6e.
            dimension_semantics=("parallel",),
        ),
        cost_estimate=cost,
    )(features, w12, b12)


def leaf_forward(features, w1, b1, w2, b2, **kwargs):
    """Convenience wrapper matching the module signature (re-fuses weights;
    prefer fuse_leaf_params once + leaf_forward_fused per step)."""
    w12, b12 = fuse_leaf_params(w1, b1, w2, b2)
    return leaf_forward_fused(features, w12, b12, **kwargs)


# --------------------------------------------------------------------------- #
# Demo / self-check
# --------------------------------------------------------------------------- #
if __name__ == "__main__":
    # Shapes implied by the module: feature_dim=32, hidden_dim=64, num_classes=16.
    B, F, H, C = 8, 32, 64, 16

    key = jax.random.PRNGKey(0)
    kx, kw1, kb1, kw2, kb2 = jax.random.split(key, 5)

    x = jax.random.normal(kx, (B, F), dtype=jnp.float32)

    # Deterministic PyTorch-Linear-style uniform init (weights pre-transposed).
    bound1 = 1.0 / (F ** 0.5)
    bound2 = 1.0 / (H ** 0.5)
    w1 = jax.random.uniform(kw1, (F, H), minval=-bound1, maxval=bound1, dtype=jnp.float32)
    b1 = jax.random.uniform(kb1, (1, H), minval=-bound1, maxval=bound1, dtype=jnp.float32)
    w2 = jax.random.uniform(kw2, (H, C), minval=-bound2, maxval=bound2, dtype=jnp.float32)
    b2 = jax.random.uniform(kb2, (1, C), minval=-bound2, maxval=bound2, dtype=jnp.float32)

    # Fuse once (static per model).
    w12, b12 = fuse_leaf_params(w1, b1, w2, b2)

    # 1) Tiny module-sized shape; force the Pallas path to exercise the kernel
    #    (auto-dispatch would route B=8 to the plain XLA dot — pure overhead).
    out = leaf_forward_fused(x, w12, b12, use_pallas=True)
    out = jax.block_until_ready(out)
    ref = (x @ w1 + b1) @ w2 + b2
    assert out.shape == (B, C)
    assert jnp.allclose(out, ref, atol=2e-2, rtol=2e-2), (
        f"max abs err = {float(jnp.max(jnp.abs(out - ref)))}")

    # 2) Multi-step ragged grid: exercises partial-last-block masking (no pad
    #    copy) and the 3-deep buffered feature stream.
    B2 = 1056
    x2 = jax.random.normal(jax.random.PRNGKey(1), (B2, F), dtype=jnp.float32)
    out2 = jax.block_until_ready(
        leaf_forward_fused(x2, w12, b12, batch_tile=256, use_pallas=True))
    ref2 = (x2 @ w1 + b1) @ w2 + b2
    assert out2.shape == (B2, C)
    assert jnp.allclose(out2, ref2, atol=2e-2, rtol=2e-2), (
        f"max abs err = {float(jnp.max(jnp.abs(out2 - ref2)))}")

    print("KERNEL_OK")
</pallas_src>

<mosaic_0001>
module attributes {stable_mosaic.version = 11 : i64} {
  func.func @leaf_fused_kernel(%arg0: i32, %arg1: memref<8x32xf32, #tpu.memory_space<vmem>>, %arg2: memref<32x16xbf16, #tpu.memory_space<vmem>>, %arg3: memref<1x16xf32, #tpu.memory_space<vmem>>, %arg4: memref<8x16xf32, #tpu.memory_space<vmem>>) attributes {dimension_semantics = [#tpu.dimension_semantics<parallel>], iteration_bounds = array<i64: 1>, scalar_prefetch = 0 : i64, scratch_operands = 0 : i64, tpu.core_type = #tpu.core_type<tc>, window_params = [{transform_indices = @transform_0, window_bounds = array<i64: 8, 32>}, {pipeline_mode = #tpu.pipeline_mode<synchronous>, transform_indices = @transform_1, window_bounds = array<i64: 32, 16>}, {pipeline_mode = #tpu.pipeline_mode<synchronous>, transform_indices = @transform_2, window_bounds = array<i64: 1, 16>}, {transform_indices = @transform_3, window_bounds = array<i64: 8, 16>}]} {
    %c0 = arith.constant 0 : index
    %c0_0 = arith.constant 0 : index
    %0 = vector.load %arg1[%c0, %c0_0] : memref<8x32xf32, #tpu.memory_space<vmem>>, vector<8x32xf32>
    %1 = arith.truncf %0 : vector<8x32xf32> to vector<8x32xbf16>
    %c0_1 = arith.constant 0 : index
    %c0_2 = arith.constant 0 : index
    %2 = vector.load %arg2[%c0_1, %c0_2] : memref<32x16xbf16, #tpu.memory_space<vmem>>, vector<32x16xbf16>
    %cst = arith.constant dense<0.000000e+00> : vector<8x16xf32>
    %3 = tpu.matmul %1, %2, %cst {dimension_numbers = #tpu.dot_dimension_numbers<[1], [0], [0], [1], [0, 0, 1, 1], [], []>} : vector<8x32xbf16>, vector<32x16xbf16>, vector<8x16xf32> -> vector<8x16xf32>
    %c0_3 = arith.constant 0 : index
    %c0_4 = arith.constant 0 : index
    %4 = vector.load %arg3[%c0_3, %c0_4] : memref<1x16xf32, #tpu.memory_space<vmem>>, vector<1x16xf32>
    %5 = vector.broadcast %4 : vector<1x16xf32> to vector<8x16xf32>
    %6 = arith.addf %3, %5 : vector<8x16xf32>
    %c0_5 = arith.constant 0 : index
    %c0_6 = arith.constant 0 : index
    %7 = vector.load %arg4[%c0_5, %c0_6] : memref<8x16xf32, #tpu.memory_space<vmem>>, vector<8x16xf32>
    tpu.vector_store %arg4[%c0_5, %c0_6], %6 {strides = array<i32>} : memref<8x16xf32, #tpu.memory_space<vmem>>, vector<8x16xf32>,
    return
  }
  func.func @transform_0(%arg0: i32) -> (i32, i32) {
    %c0_i32 = arith.constant 0 : i32
    %c0_i32_0 = arith.constant 0 : i32
    return %arg0, %c0_i32 : i32, i32
  }
  func.func @transform_1(%arg0: i32) -> (i32, i32) {
    %c0_i32 = arith.constant 0 : i32
    %c0_i32_0 = arith.constant 0 : i32
    %c0_i32_1 = arith.constant 0 : i32
    return %c0_i32, %c0_i32_0 : i32, i32
  }
  func.func @transform_2(%arg0: i32) -> (i32, i32) {
    %c0_i32 = arith.constant 0 : i32
    %c0_i32_0 = arith.constant 0 : i32
    %c0_i32_1 = arith.constant 0 : i32
    return %c0_i32, %c0_i32_0 : i32, i32
  }
  func.func @transform_3(%arg0: i32) -> (i32, i32) {
    %c0_i32 = arith.constant 0 : i32
    %c0_i32_0 = arith.constant 0 : i32
    return %arg0, %c0_i32 : i32, i32
  }
}

</mosaic_0001>

<bundles_post_ra>
// kernel: tpu_custom_call.1
= control target key start
LH: loop header
LB: loop body
LE: loop exit
PB: predicated region body
PF: predicated region fallthrough
CT: control target
= control target key end

     0   :  { %v145_v1 = vmov 0.0   ;;  %vm146_vm0 = vmmov 0   ;;  %s192_s0 = inlined_call_operand.vmem [shape: f32[8,32], index: 0, kind: input, shape index: {}]   ;;  %s193_s1 = inlined_call_operand.vmem [shape: bf16[32,16], index: 1, kind: input, shape index: {}]   ;;  %s194_s2 = inlined_call_operand.vmem [shape: f32[1,16], index: 2, kind: input, shape index: {}]   ;;  %s195_s3 = inlined_call_operand.hbm [shape: f32[8,16], index: 3, kind: output, shape index: {}]  }
   0x1   :  { %v119_v0 = vld [vmem:[%s193_s1] sm:$0xff]   ;;  %108 = vmatprep.subr.bf16.mxu0 %v145_v1  ;;  %v120_v2 = vld [vmem:[%s193_s1 + $0x8] sm:$0xff]   ;;  %112 = vmatprep.mubr.msk.bf16.mxu0 %vm146_vm0, %v145_v1 }
   0x2   :  { %109 = vmatpush3.bf16.msra.mxu0 %v119_v0  ;;  %v16_v3 = vld [vmem:[%s192_s0] sm:$0xff] }
   0x3   :  { %8 = vsyncpa [#allocation3], 0  ;;  %110 = vmatprep.subr.bf16.mxu0 %v145_v1  ;;  %v17_v4 = vpack.c.bf16 %v16_v3, %v16_v3  ;;  %vm41_vm1 = vcmask 261120   ;;  %v101_v5 = vld [vmem:[%s194_s2] ss:$0 sm:$0xff]  ;;  %s147_s20 = smov [#allocation2]  }
   0x4   :  { %s93_s21 = sshll.u32 %s147_s20, 4  ;;  %vm85_vm2 = vcmask 130048   ;;  %s94_s21 = int_to_ptr.vmem [resolvable:$true] %s93_s21 }
   0x5   :  { %s121_s0 = scalar_lea.vmem %s94_s21, 128  ;;  %p126_p1 = scmp.lt.s32.totalorder %s94_s21, %s94_s21 }
   0x6   :  { %111 = vmatpush3.bf16.msra.mxu0 %v120_v2  ;;  %p122_p0 = scmp.ne.s32.totalorder %s94_s21, %s121_s0  ;;  %p127_p2 = scmp.lt.s32.totalorder %s121_s0, %s121_s0 }
   0x8   :  { %p128_p3 = por %p127_p2, %p126_p1 }
   0x9   :  { %113 = vmatmul.mubr.msk.bf16.vlgmr.msra.gmra.mrb[0].mxu0 %vm41_vm1, %v17_v4 }
   0xa   :  { %p129_p4 = pnand %p128_p3, %p122_p0 }
  0xdc   :  { %v79_v6 = vpop.f32.mrb[0].mxu0 }
  0xdd   :  { %v80_v7 = vadd.f32 %v101_v5, %v79_v6  ;;  %v114_v8 = vpop.f32.mrb[1].mxu0 }
  0xde   :  { %v82_v9 = vpop.f32.mrb[2].mxu0 }
  0xdf   :  { %v115_v10 = vpop.f32.mrb[3].mxu0  ;;  %86 = vst.msk [vmem:[#allocation2] sm:$0xff] %vm85_vm2, %v80_v7 }
  0xe0   :  { %132 = shalt.err (!%p129_p4)
}
  0xe1   :  { %s133_s2 = scalar_lea.hbm %s195_s3, 128 }
  0xe2   :  { %p134_p5 = scmp.ne.s32.totalorder %s195_s3, %s133_s2  ;;  %p137_p6 = scmp.lt.u32.totalorder %s133_s2, %s195_s3 }
  0xe4   :  { %p139_p7 = pnand %p137_p6, %p134_p5 }
  0xe6   :  { %142 = shalt.err (!%p139_p7)
}
  0xe7   :  { %96 = dma.vmem_to_hbm [thread:$0]  %s94_s21, 128, %s195_s3, [#allocation3]  }
  0xe8   :  { %143 = dma.done.wait [#allocation3], 128  }
  0xe9   :  { %144 = vsyncadd [#allocation3], 4294967168 }
  0xea   :  { %100 = vsyncpa [#allocation3], 1 }

</bundles_post_ra>
